<compile_context>
chip_gen: v7x
topology: tpu7x:2x2x1
jax: 0.10.0
libtpu: 0.0.40
codegen_flags: <defaults>
</compile_context>

<pallas_src>
import functools

import jax
import jax.numpy as jnp
from jax import lax
from jax.experimental import pallas as pl
from jax.experimental.pallas import tpu as pltpu

_LANE = 128     # feature dims padded to a multiple of this (lane width)
_SUBLANE = 8    # batch padded to this inside the kernel (sublane width)


def _round_up(n, m):
    return ((n + m - 1) // m) * m


def _fcpa_fused_kernel(x_ref, w_ref, b_ref,
                       logits_ref, probs_ref, action_ref,
                       x_pad_ref,
                       *, n_layers, in_dim, out_dim):
    """Fused MLP forward + policy head.

      x_ref      : [batch, in_dim]            f32   (full-extent block)
      w_ref      : [L, D_PAD, D_PAD]          bf16  (stacked, zero-padded)
      b_ref      : [L, 1, D_PAD]              f32   (stacked, zero-padded)
      logits_ref : [batch, D_PAD]             f32   (pad lanes are exactly 0)
      probs_ref  : [batch, D_PAD]             f32   (softmax over real lanes)
      action_ref : [batch, 1]                 i32   (greedy argmax)
      x_pad_ref  : [B_SUB, D_PAD] VMEM scratch
    ReLU after every layer except the last (matches FCPA.forward).
    """
    batch = x_ref.shape[0]
    d_pad = w_ref.shape[-1]

    # Lane/sublane-pad the observations on-chip (no extra XLA pad fusion).
    x_pad_ref[...] = jnp.zeros_like(x_pad_ref)
    x_pad_ref[:batch, :in_dim] = x_ref[...]
    cur = x_pad_ref[...]                                   # [B_SUB, D_PAD] f32

    for i in range(n_layers):                              # statically unrolled
        w = w_ref[i]                                       # [D_PAD, D_PAD] bf16
        b = b_ref[i]                                       # [1, D_PAD]     f32
        acc = jnp.dot(cur.astype(jnp.bfloat16), w,
                      preferred_element_type=jnp.float32) + b
        if i < n_layers - 1:
            cur = jnp.maximum(acc, 0.0)                    # stays on-chip
        else:
            cur = acc

    logits = cur                                           # pad cols are 0
    logits_ref[...] = logits[:batch, :]

    # Fused policy head: masked softmax + greedy argmax over the real lanes.
    col = lax.broadcasted_iota(jnp.int32, logits.shape, 1)
    valid = col < out_dim
    masked = jnp.where(valid, logits, -jnp.inf)
    row_max = jnp.max(masked, axis=-1, keepdims=True)
    e = jnp.exp(masked - row_max)                          # exp(-inf)=0 on pads
    inv_sum = pl.reciprocal(jnp.sum(e, axis=-1, keepdims=True), approx=True)
    probs_ref[...] = (e * inv_sum)[:batch, :]

    col_f = col.astype(jnp.float32)
    is_max = masked == row_max
    arg = jnp.min(jnp.where(is_max, col_f, jnp.float32(d_pad)),
                  axis=-1, keepdims=True)
    action_ref[...] = arg[:batch, :].astype(jnp.int32)


def init_fcpa_params(key, input_shape, output_shape, hidden_layers):
    """Deterministic init matching torch.nn.Linear default
    (U[-1/sqrt(fan_in), 1/sqrt(fan_in)]). Returns unpadded f32 (w [in,out], b [out])."""
    dims = [input_shape] + list(hidden_layers) + [output_shape]
    params = []
    for i in range(len(dims) - 1):
        fan_in, fan_out = dims[i], dims[i + 1]
        key, kw, kb = jax.random.split(key, 3)
        bound = 1.0 / float(fan_in) ** 0.5
        w = jax.random.uniform(kw, (fan_in, fan_out), jnp.float32, -bound, bound)
        b = jax.random.uniform(kb, (fan_out,), jnp.float32, -bound, bound)
        params.append((w, b))
    return params


def pack_fcpa_params(raw_params):
    """Stack + pad all layers once, at init time.

    Every layer is zero-padded to the SAME [D_PAD, D_PAD] (D_PAD = max padded
    dim), so the whole net is 2 arrays -> 3 input DMAs total:
      W : [L, D_PAD, D_PAD] bfloat16   (transposed vs torch Linear.weight)
      B : [L, 1, D_PAD]     float32
    Zero padding is semantics-preserving: padded activation lanes stay 0.
    """
    dims = [w.shape[0] for w, _ in raw_params] + [raw_params[-1][0].shape[1]]
    d_pad = _round_up(max(dims), _LANE)
    n_layers = len(raw_params)
    w_stack = jnp.zeros((n_layers, d_pad, d_pad), jnp.float32)
    b_stack = jnp.zeros((n_layers, 1, d_pad), jnp.float32)
    for i, (w, b) in enumerate(raw_params):
        fi, fo = w.shape
        w_stack = w_stack.at[i, :fi, :fo].set(w)
        b_stack = b_stack.at[i, 0, :fo].set(b)
    return w_stack.astype(jnp.bfloat16), b_stack, d_pad


def fcpa_forward(w_stack, b_stack, x, *, out_dim, layer_dims):
    """FCPA forward + policy head as one fused Pallas kernel.

    Returns (logits_padded [batch, D_PAD]  — real logits in [:, :out_dim], pads 0,
             probs_padded  [batch, D_PAD]  — softmax over real lanes, pads 0,
             greedy_action [batch, 1] int32).
    """
    batch, in_dim = x.shape
    n_layers, d_pad, _ = w_stack.shape
    b_sub = _round_up(max(batch, 1), _SUBLANE)

    kernel = functools.partial(_fcpa_fused_kernel, n_layers=n_layers,
                               in_dim=in_dim, out_dim=out_dim)

    # Advisory cost estimate with REAL (unpadded) work, not padded dims.
    flops = sum(2 * batch * layer_dims[i] * layer_dims[i + 1]
                for i in range(n_layers))
    bytes_accessed = (x.size * 4
                      + sum(layer_dims[i] * layer_dims[i + 1] * 2
                            for i in range(n_layers))          # bf16 weights
                      + sum(layer_dims[i + 1] * 4 for i in range(n_layers))
                      + 2 * batch * d_pad * 4 + batch * 4)      # outputs
    transcendentals = batch * out_dim                           # exp in softmax

    return pl.pallas_call(
        kernel,
        out_shape=(
            jax.ShapeDtypeStruct((batch, d_pad), jnp.float32),
            jax.ShapeDtypeStruct((batch, d_pad), jnp.float32),
            jax.ShapeDtypeStruct((batch, 1), jnp.int32),
        ),
        in_specs=[
            pl.BlockSpec((batch, in_dim), lambda: (0, 0)),
            pl.BlockSpec((n_layers, d_pad, d_pad), lambda: (0, 0, 0)),
            pl.BlockSpec((n_layers, 1, d_pad), lambda: (0, 0, 0)),
        ],
        out_specs=[
            pl.BlockSpec((batch, d_pad), lambda: (0, 0)),
            pl.BlockSpec((batch, d_pad), lambda: (0, 0)),
            pl.BlockSpec((batch, 1), lambda: (0, 0)),
        ],
        scratch_shapes=[pltpu.VMEM((b_sub, d_pad), jnp.float32)],
        cost_estimate=pl.CostEstimate(
            flops=flops, transcendentals=transcendentals,
            bytes_accessed=bytes_accessed),
    )(x.astype(jnp.float32), w_stack, b_stack)


if __name__ == "__main__":
    # Small shapes consistent with the module: batch=2, input_shape=16,
    # hidden_layers=[32, 32], output_shape=4.
    batch = 2
    input_shape = 16
    hidden_layers = [32, 32]
    output_shape = 4
    layer_dims = (input_shape, *hidden_layers, output_shape)

    key = jax.random.PRNGKey(0)
    key, kx = jax.random.split(key)
    x = jax.random.normal(kx, (batch, input_shape), jnp.float32)

    raw_params = init_fcpa_params(key, input_shape, output_shape, hidden_layers)
    w_stack, b_stack, d_pad = pack_fcpa_params(raw_params)

    forward = jax.jit(functools.partial(
        fcpa_forward, out_dim=output_shape, layer_dims=layer_dims))
    logits_p, probs_p, action = forward(w_stack, b_stack, x)
    jax.block_until_ready((logits_p, probs_p, action))

    logits = logits_p[:, :output_shape]
    probs = probs_p[:, :output_shape]

    # Reference 1: same math as the kernel (bf16 operands, f32 accumulation).
    ref_bf16 = x
    for i, (w, b) in enumerate(raw_params):
        ref_bf16 = jnp.dot(ref_bf16.astype(jnp.bfloat16), w.astype(jnp.bfloat16),
                           preferred_element_type=jnp.float32) + b
        if i < len(raw_params) - 1:
            ref_bf16 = jnp.maximum(ref_bf16, 0.0)

    # Reference 2: pure f32 math (semantics sanity check, looser tolerance).
    ref_f32 = x
    for i, (w, b) in enumerate(raw_params):
        ref_f32 = ref_f32 @ w + b
        if i < len(raw_params) - 1:
            ref_f32 = jnp.maximum(ref_f32, 0.0)

    assert logits.shape == (batch, output_shape)
    assert jnp.allclose(logits, ref_bf16, atol=1e-3, rtol=1e-3)
    assert jnp.allclose(logits, ref_f32, atol=5e-2, rtol=5e-2)
    assert jnp.allclose(logits_p[:, output_shape:], 0.0)          # pad lanes
    assert jnp.allclose(probs_p[:, output_shape:], 0.0)
    assert jnp.allclose(jnp.sum(probs, axis=-1), 1.0, atol=1e-2)  # approx rcp
    assert (action[:, 0] == jnp.argmax(logits, axis=-1)).all()    # greedy head

    # TODO(synk): Categorical sampling for softmax_policy (needs RNG; sample
    # from the returned probs), Adam optimizer state, grad clipping, entropy
    # loss, and reset_weights are training/host utilities outside forward().
    print("KERNEL_OK")
</pallas_src>

<mosaic_0001>
module attributes {stable_mosaic.version = 11 : i64} {
  func.func @_fcpa_fused_kernel(%arg0: memref<2x16xf32, #tpu.memory_space<vmem>>, %arg1: memref<3x128x128xbf16, #tpu.memory_space<vmem>>, %arg2: memref<3x1x128xf32, #tpu.memory_space<vmem>>, %arg3: memref<2x128xf32, #tpu.memory_space<vmem>>, %arg4: memref<2x128xf32, #tpu.memory_space<vmem>>, %arg5: memref<2x1xi32, #tpu.memory_space<vmem>>, %arg6: memref<8x128xf32, #tpu.memory_space<vmem>>) attributes {dimension_semantics = [], scalar_prefetch = 0 : i64, scratch_operands = 1 : i64, tpu.core_type = #tpu.core_type<tc>} {
    %cst = arith.constant 0.000000e+00 : f32
    %0 = vector.broadcast %cst : f32 to vector<8x128xf32>
    %c0 = arith.constant 0 : index
    %c0_0 = arith.constant 0 : index
    %1 = vector.load %arg6[%c0, %c0_0] : memref<8x128xf32, #tpu.memory_space<vmem>>, vector<8x128xf32>
    tpu.vector_store %arg6[%c0, %c0_0], %0 {strides = array<i32>} : memref<8x128xf32, #tpu.memory_space<vmem>>, vector<8x128xf32>,
    %c0_1 = arith.constant 0 : index
    %c0_2 = arith.constant 0 : index
    %2 = vector.load %arg0[%c0_1, %c0_2] : memref<2x16xf32, #tpu.memory_space<vmem>>, vector<2x16xf32>
    %c0_3 = arith.constant 0 : index
    %c0_4 = arith.constant 0 : index
    %3 = vector.load %arg6[%c0_3, %c0_4] : memref<8x128xf32, #tpu.memory_space<vmem>>, vector<2x16xf32>
    tpu.vector_store %arg6[%c0_3, %c0_4], %2 {strides = array<i32>} : memref<8x128xf32, #tpu.memory_space<vmem>>, vector<2x16xf32>,
    %c0_5 = arith.constant 0 : index
    %c0_6 = arith.constant 0 : index
    %4 = vector.load %arg6[%c0_5, %c0_6] : memref<8x128xf32, #tpu.memory_space<vmem>>, vector<8x128xf32>
    %c0_7 = arith.constant 0 : index
    %c0_8 = arith.constant 0 : index
    %c0_9 = arith.constant 0 : index
    %5 = vector.load %arg1[%c0_7, %c0_8, %c0_9] : memref<3x128x128xbf16, #tpu.memory_space<vmem>>, vector<1x128x128xbf16>
    %6 = vector.shape_cast %5 : vector<1x128x128xbf16> to vector<128x128xbf16>
    %c0_10 = arith.constant 0 : index
    %c0_11 = arith.constant 0 : index
    %c0_12 = arith.constant 0 : index
    %7 = vector.load %arg2[%c0_10, %c0_11, %c0_12] : memref<3x1x128xf32, #tpu.memory_space<vmem>>, vector<1x1x128xf32>
    %8 = vector.shape_cast %7 : vector<1x1x128xf32> to vector<1x128xf32>
    %9 = arith.truncf %4 : vector<8x128xf32> to vector<8x128xbf16>
    %cst_13 = arith.constant dense<0.000000e+00> : vector<8x128xf32>
    %10 = tpu.matmul %9, %6, %cst_13 {dimension_numbers = #tpu.dot_dimension_numbers<[1], [0], [0], [1], [0, 0, 1, 1], [], []>} : vector<8x128xbf16>, vector<128x128xbf16>, vector<8x128xf32> -> vector<8x128xf32>
    %11 = vector.broadcast %8 : vector<1x128xf32> to vector<8x128xf32>
    %12 = arith.addf %10, %11 : vector<8x128xf32>
    %cst_14 = arith.constant 0.000000e+00 : f32
    %13 = vector.broadcast %cst_14 : f32 to vector<8x128xf32>
    %14 = arith.maximumf %12, %13 : vector<8x128xf32>
    %c1 = arith.constant 1 : index
    %c0_15 = arith.constant 0 : index
    %c0_16 = arith.constant 0 : index
    %15 = vector.load %arg1[%c1, %c0_15, %c0_16] : memref<3x128x128xbf16, #tpu.memory_space<vmem>>, vector<1x128x128xbf16>
    %16 = vector.shape_cast %15 : vector<1x128x128xbf16> to vector<128x128xbf16>
    %c1_17 = arith.constant 1 : index
    %c0_18 = arith.constant 0 : index
    %c0_19 = arith.constant 0 : index
    %17 = vector.load %arg2[%c1_17, %c0_18, %c0_19] : memref<3x1x128xf32, #tpu.memory_space<vmem>>, vector<1x1x128xf32>
    %18 = vector.shape_cast %17 : vector<1x1x128xf32> to vector<1x128xf32>
    %19 = arith.truncf %14 : vector<8x128xf32> to vector<8x128xbf16>
    %cst_20 = arith.constant dense<0.000000e+00> : vector<8x128xf32>
    %20 = tpu.matmul %19, %16, %cst_20 {dimension_numbers = #tpu.dot_dimension_numbers<[1], [0], [0], [1], [0, 0, 1, 1], [], []>} : vector<8x128xbf16>, vector<128x128xbf16>, vector<8x128xf32> -> vector<8x128xf32>
    %21 = vector.broadcast %18 : vector<1x128xf32> to vector<8x128xf32>
    %22 = arith.addf %20, %21 : vector<8x128xf32>
    %cst_21 = arith.constant 0.000000e+00 : f32
    %23 = vector.broadcast %cst_21 : f32 to vector<8x128xf32>
    %24 = arith.maximumf %22, %23 : vector<8x128xf32>
    %c2 = arith.constant 2 : index
    %c0_22 = arith.constant 0 : index
    %c0_23 = arith.constant 0 : index
    %25 = vector.load %arg1[%c2, %c0_22, %c0_23] : memref<3x128x128xbf16, #tpu.memory_space<vmem>>, vector<1x128x128xbf16>
    %26 = vector.shape_cast %25 : vector<1x128x128xbf16> to vector<128x128xbf16>
    %c2_24 = arith.constant 2 : index
    %c0_25 = arith.constant 0 : index
    %c0_26 = arith.constant 0 : index
    %27 = vector.load %arg2[%c2_24, %c0_25, %c0_26] : memref<3x1x128xf32, #tpu.memory_space<vmem>>, vector<1x1x128xf32>
    %28 = vector.shape_cast %27 : vector<1x1x128xf32> to vector<1x128xf32>
    %29 = arith.truncf %24 : vector<8x128xf32> to vector<8x128xbf16>
    %cst_27 = arith.constant dense<0.000000e+00> : vector<8x128xf32>
    %30 = tpu.matmul %29, %26, %cst_27 {dimension_numbers = #tpu.dot_dimension_numbers<[1], [0], [0], [1], [0, 0, 1, 1], [], []>} : vector<8x128xbf16>, vector<128x128xbf16>, vector<8x128xf32> -> vector<8x128xf32>
    %31 = vector.broadcast %28 : vector<1x128xf32> to vector<8x128xf32>
    %32 = arith.addf %30, %31 : vector<8x128xf32>
    %33 = vector.extract_strided_slice %32 {offsets = [0, 0], sizes = [2, 128], strides = [1, 1]} : vector<8x128xf32> to vector<2x128xf32>
    %c0_28 = arith.constant 0 : index
    %c0_29 = arith.constant 0 : index
    %34 = vector.load %arg3[%c0_28, %c0_29] : memref<2x128xf32, #tpu.memory_space<vmem>>, vector<2x128xf32>
    tpu.vector_store %arg3[%c0_28, %c0_29], %33 {strides = array<i32>} : memref<2x128xf32, #tpu.memory_space<vmem>>, vector<2x128xf32>,
    %35 = tpu.iota {dimensions = array<i32: 1>} : vector<8x128xi32>
    %c4_i32 = arith.constant 4 : i32
    %36 = vector.broadcast %c4_i32 : i32 to vector<8x128xi32>
    %37 = arith.cmpi slt, %35, %36 : vector<8x128xi32>
    %cst_30 = arith.constant 0xFF800000 : f32
    %38 = vector.broadcast %cst_30 : f32 to vector<8x128xf32>
    %39 = arith.select %37, %32, %38 : vector<8x128xi1>, vector<8x128xf32>
    %cst_31 = arith.constant dense<0xFF800000> : vector<8xf32>
    %40 = vector.multi_reduction <maximumf>, %39, %cst_31 [1] : vector<8x128xf32> to vector<8xf32>
    %41 = vector.shape_cast %40 : vector<8xf32> to vector<8x1xf32>
    %42 = vector.broadcast %41 : vector<8x1xf32> to vector<8x128xf32>
    %43 = arith.subf %39, %42 : vector<8x128xf32>
    %44 = math.exp %43 : vector<8x128xf32>
    %cst_32 = arith.constant dense<0.000000e+00> : vector<8xf32>
    %45 = vector.multi_reduction <add>, %44, %cst_32 [1] : vector<8x128xf32> to vector<8xf32>
    %46 = vector.shape_cast %45 : vector<8xf32> to vector<8x1xf32>
    %47 = tpu.reciprocal %46 {approx = true} : vector<8x1xf32> -> vector<8x1xf32>
    %48 = vector.broadcast %47 : vector<8x1xf32> to vector<8x128xf32>
    %49 = arith.mulf %44, %48 : vector<8x128xf32>
    %50 = vector.extract_strided_slice %49 {offsets = [0, 0], sizes = [2, 128], strides = [1, 1]} : vector<8x128xf32> to vector<2x128xf32>
    %c0_33 = arith.constant 0 : index
    %c0_34 = arith.constant 0 : index
    %51 = vector.load %arg4[%c0_33, %c0_34] : memref<2x128xf32, #tpu.memory_space<vmem>>, vector<2x128xf32>
    tpu.vector_store %arg4[%c0_33, %c0_34], %50 {strides = array<i32>} : memref<2x128xf32, #tpu.memory_space<vmem>>, vector<2x128xf32>,
    %52 = arith.sitofp %35 : vector<8x128xi32> to vector<8x128xf32>
    %53 = vector.broadcast %41 : vector<8x1xf32> to vector<8x128xf32>
    %54 = arith.cmpf oeq, %39, %53 : vector<8x128xf32>
    %cst_35 = arith.constant 1.280000e+02 : f32
    %55 = vector.broadcast %cst_35 : f32 to vector<8x128xf32>
    %56 = arith.select %54, %52, %55 : vector<8x128xi1>, vector<8x128xf32>
    %cst_36 = arith.constant dense<0x7F800000> : vector<8xf32>
    %57 = vector.multi_reduction <minimumf>, %56, %cst_36 [1] : vector<8x128xf32> to vector<8xf32>
    %58 = vector.shape_cast %57 : vector<8xf32> to vector<8x1xf32>
    %59 = vector.extract_strided_slice %58 {offsets = [0, 0], sizes = [2, 1], strides = [1, 1]} : vector<8x1xf32> to vector<2x1xf32>
    %60 = arith.fptosi %59 : vector<2x1xf32> to vector<2x1xi32>
    %c0_37 = arith.constant 0 : index
    %c0_38 = arith.constant 0 : index
    %61 = vector.load %arg5[%c0_37, %c0_38] : memref<2x1xi32, #tpu.memory_space<vmem>>, vector<2x1xi32>
    tpu.vector_store %arg5[%c0_37, %c0_38], %60 {strides = array<i32>} : memref<2x1xi32, #tpu.memory_space<vmem>>, vector<2x1xi32>,
    return
  }
}

</mosaic_0001>

<bundles_post_ra>
// kernel: fcpa_forward.1
= control target key start
LH: loop header
LB: loop body
LE: loop exit
PB: predicated region body
PF: predicated region fallthrough
CT: control target
= control target key end

     0   :  { %11 = vsyncpa [#allocation4], 0  ;;  %s781_s0 = inlined_call_operand.vmem [shape: f32[2,16], index: 0, kind: input, shape index: {}]   ;;  %s782_s1 = inlined_call_operand.hbm [shape: bf16[3,128,128], index: 1, kind: input, shape index: {}]   ;;  %s783_s2 = inlined_call_operand.vmem [shape: f32[3,1,128], index: 2, kind: input, shape index: {}]   ;;  %s784_s3 = inlined_call_operand.hbm [shape: f32[2,128], index: 3, kind: output, shape index: {0}]   ;;  %s785_s4 = inlined_call_operand.hbm [shape: f32[2,128], index: 4, kind: output, shape index: {1}]   ;;  %s786_s5 = inlined_call_operand.vmem [shape: s32[2,1], index: 5, kind: output, shape index: {2}]  }
   0x1   :  { %12 = vsyncpa [#allocation5], 0 }
   0x2   :  { %13 = vsyncpa [#allocation8], 0  ;;  %s662_s18 = smov [#allocation3]   ;;  %s590_s22 = scalar_lea.hbm %s782_s1, 3072 }
   0x3   :  { %s21_s19 = sshll.u32 %s662_s18, 4  ;;  %p591_p0 = scmp.ne.s32.totalorder %s782_s1, %s590_s22  ;;  %s22_s19 = int_to_ptr.vmem [resolvable:$true] %s21_s19 }
   0x4   :  { %p594_p1 = scmp.lt.u32.totalorder %s590_s22, %s782_s1 }
   0x6   :  { %p596_p2 = pnand %p594_p1, %p591_p0 }
   0x8   :  { %599 = shalt.err (!%p596_p2)
}
   0x9   :  { %s600_s27 = scalar_lea.vmem %s22_s19, 3072  ;;  %p605_p4 = scmp.lt.s32.totalorder %s22_s19, %s22_s19 }
   0xa   :  { %p601_p3 = scmp.ne.s32.totalorder %s22_s19, %s600_s27  ;;  %p606_p5 = scmp.lt.s32.totalorder %s600_s27, %s600_s27 }
   0xc   :  { %p607_p6 = por %p606_p5, %p605_p4 }
   0xe   :  { %p608_p7 = pnand %p607_p6, %p601_p3 }
  0x10   :  { %611 = shalt.err (!%p608_p7)
}
  0x11   :  { %s663_s28 = smov 64   ;;  %s664_s29 = smov 4  }
  0x12   :  { %27 = dma.hbm_to_vmem [thread:$0]  %s782_s1, 3072, %s22_s19, [#allocation4], %s663_s28, %s663_s28, %s664_s29  }
  0x13   :  { %656 = dma.done.wait [#allocation4], 3072  }
  0x14   :  { %657 = vsyncadd [#allocation4], 4294964224  ;;  %v665_v0 = vmov 0.0   ;;  %vm666_vm0 = vmmov 0   ;;  %v562_v1 = vld [vmem:[#allocation3] sm:$0xff]   ;;  %v563_v2 = vld [vmem:[#allocation3 + $0x8] sm:$0xff]   ;;  %v382_v44 = vlaneseq }
  0x15   :  { %493 = vmatprep.subr.bf16.mxu0 %v665_v0  ;;  %34 = vst [vmem:[#allocation2] sm:$0xff] %v665_v0  ;;  %509 = vmatprep.mubr.msk.bf16.mxu0 %vm666_vm0, %v665_v0  ;;  %v564_v3 = vld [vmem:[#allocation3 + $0x10] sm:$0xff]   ;;  %vm36_vm1 = vcmask 123904   ;;  %v35_v4 = vld [vmem:[%s781_s0] sm:$0x3]  ;;  %v570_v5 = vld [vmem:[#allocation3 + $0x40] sm:$0xff]  }
  0x16   :  { %513 = vmatprep.subr.bf16.mxu1 %v665_v0  ;;  %529 = vmatprep.mubr.msk.bf16.mxu1 %vm666_vm0, %v665_v0  ;;  %37 = vst.msk [vmem:[#allocation2] sm:$0x3] %vm36_vm1, %v35_v4  ;;  %v565_v6 = vld [vmem:[#allocation3 + $0x18] sm:$0xff]   ;;  %v571_v7 = vld [vmem:[#allocation3 + $0x48] sm:$0xff]   ;;  %v566_v8 = vld [vmem:[#allocation3 + $0x20] sm:$0xff]   ;;  %v383_v45 = vand.u32 127, %v382_v44 }
  0x17   :  { %494 = vmatpush3.bf16.msra.mxu0 %v562_v1  ;;  %514 = vmatpush3.bf16.msra.mxu1 %v570_v5  ;;  %v572_v9 = vld [vmem:[#allocation3 + $0x50] sm:$0xff]   ;;  %v567_v10 = vld [vmem:[#allocation3 + $0x28] sm:$0xff]   ;;  %v573_v11 = vld [vmem:[#allocation3 + $0x58] sm:$0xff]  }
  0x18   :  { %495 = vmatprep.subr.bf16.mxu0 %v665_v0  ;;  %515 = vmatprep.subr.bf16.mxu1 %v665_v0  ;;  %v568_v12 = vld [vmem:[#allocation3 + $0x30] sm:$0xff]   ;;  %v574_v13 = vld [vmem:[#allocation3 + $0x60] sm:$0xff]   ;;  %v569_v14 = vld [vmem:[#allocation3 + $0x38] sm:$0xff]   ;;  %vm384_vm2 = vcmp.lt.s32.totalorder %v383_v45, 4  ;;  %v396_v53 = vcvt.s32.f32 %v383_v45 }
  0x19   :  { %v575_v16 = vld [vmem:[#allocation3 + $0x68] sm:$0xff]   ;;  %v576_v18 = vld [vmem:[#allocation3 + $0x70] sm:$0xff]   ;;  %v577_v19 = vld [vmem:[#allocation3 + $0x78] sm:$0xff]  }
  0x1a   :  { %v578_v20 = vld [vmem:[#allocation3 + $0x80] sm:$0xff]   ;;  %v579_v21 = vld [vmem:[#allocation3 + $0x88] sm:$0xff]   ;;  %v580_v22 = vld [vmem:[#allocation3 + $0x90] sm:$0xff]  }
  0x1b   :  { %496 = vmatpush3.bf16.msra.mxu0 %v563_v2  ;;  %516 = vmatpush3.bf16.msra.mxu1 %v571_v7  ;;  %v581_v23 = vld [vmem:[#allocation3 + $0x98] sm:$0xff]   ;;  %v582_v24 = vld [vmem:[#allocation3 + $0xa0] sm:$0xff]   ;;  %v583_v25 = vld [vmem:[#allocation3 + $0xa8] sm:$0xff]  }
  0x1c   :  { %497 = vmatprep.subr.bf16.mxu0 %v665_v0  ;;  %517 = vmatprep.subr.bf16.mxu1 %v665_v0  ;;  %v437_v26 = vld [vmem:[%s783_s2] ss:$0 sm:$0xff]  ;;  %v584_v34 = vld [vmem:[#allocation3 + $0xb0] sm:$0xff]   ;;  %v447_v36 = vld [vmem:[%s783_s2 + $0x1] ss:$0 sm:$0xff] }
  0x1d   :  { %v38_v15 = vld [vmem:[#allocation2] sm:$0xff] }
  0x1e   :  { %v56_v17 = vpack.c.bf16 %v38_v15, %v38_v15  ;;  %v585_v35 = vld [vmem:[#allocation3 + $0xb8] sm:$0xff]  }
  0x1f   :  { %498 = vmatpush3.bf16.msra.mxu0 %v564_v3  ;;  %518 = vmatpush3.bf16.msra.mxu1 %v572_v9  ;;  %v457_v46 = vld [vmem:[%s783_s2 + $0x2] ss:$0 sm:$0xff]  ;;  %s667_s2 = smov [#allocation6]  }
  0x20   :  { %499 = vmatprep.subr.bf16.mxu0 %v665_v0  ;;  %519 = vmatprep.subr.bf16.mxu1 %v665_v0  ;;  %s410_s13 = sshll.u32 %s667_s2, 4  ;;  %s411_s13 = int_to_ptr.vmem [resolvable:$true] %s410_s13 }
  0x21   :  { %s612_s14 = scalar_lea.vmem %s411_s13, 32  ;;  %p617_p9 = scmp.lt.s32.totalorder %s411_s13, %s411_s13 }
  0x22   :  { %p613_p8 = scmp.ne.s32.totalorder %s411_s13, %s612_s14  ;;  %p618_p10 = scmp.lt.s32.totalorder %s612_s14, %s612_s14 }
  0x23   :  { %500 = vmatpush3.bf16.msra.mxu0 %v565_v6  ;;  %520 = vmatpush3.bf16.msra.mxu1 %v573_v11 }
  0x24   :  { %501 = vmatprep.subr.bf16.mxu0 %v665_v0  ;;  %521 = vmatprep.subr.bf16.mxu1 %v665_v0  ;;  %p619_p11 = por %p618_p10, %p617_p9 }
  0x26   :  { %p620_p12 = pnand %p619_p11, %p613_p8 }
  0x27   :  { %502 = vmatpush3.bf16.msra.mxu0 %v566_v8  ;;  %522 = vmatpush3.bf16.msra.mxu1 %v574_v13 }
  0x28   :  { %503 = vmatprep.subr.bf16.mxu0 %v665_v0  ;;  %523 = vmatprep.subr.bf16.mxu1 %v665_v0 }
  0x2b   :  { %504 = vmatpush3.bf16.msra.mxu0 %v567_v10  ;;  %524 = vmatpush3.bf16.msra.mxu1 %v575_v16 }
  0x2c   :  { %505 = vmatprep.subr.bf16.mxu0 %v665_v0  ;;  %525 = vmatprep.subr.bf16.mxu1 %v665_v0 }
  0x2f   :  { %506 = vmatpush3.bf16.msra.mxu0 %v568_v12  ;;  %526 = vmatpush3.bf16.msra.mxu1 %v576_v18 }
  0x30   :  { %507 = vmatprep.subr.bf16.mxu0 %v665_v0  ;;  %527 = vmatprep.subr.bf16.mxu1 %v665_v0 }
  0x33   :  { %508 = vmatpush3.bf16.msra.mxu0 %v569_v14  ;;  %528 = vmatpush3.bf16.msra.mxu1 %v577_v19 }
  0x34   :  { %533 = vmatprep.subr.bf16.mxu0 %v665_v0 }
  0x36   :  { %510 = vmatmul.mubr.bf16.vlgmr.msra.gmra.mrb[0].mxu0 %v56_v17 }
  0x37   :  { %549 = vmatprep.mubr.msk.bf16.mxu0 %vm666_vm0, %v665_v0  ;;  %534 = vmatpush3.bf16.msra.mxu0 %v578_v20 }
  0x38   :  { %535 = vmatprep.subr.bf16.mxu0 %v665_v0 }
  0x3b   :  { %536 = vmatpush3.bf16.msra.mxu0 %v579_v21 }
  0x3c   :  { %537 = vmatprep.subr.bf16.mxu0 %v665_v0 }
  0x3f   :  { %538 = vmatpush3.bf16.msra.mxu0 %v580_v22 }
  0x40   :  { %539 = vmatprep.subr.bf16.mxu0 %v665_v0 }
  0x43   :  { %540 = vmatpush3.bf16.msra.mxu0 %v581_v23 }
  0x44   :  { %541 = vmatprep.subr.bf16.mxu0 %v665_v0 }
  0x47   :  { %542 = vmatpush3.bf16.msra.mxu0 %v582_v24 }
  0x48   :  { %543 = vmatprep.subr.bf16.mxu0 %v665_v0 }
  0x4b   :  { %544 = vmatpush3.bf16.msra.mxu0 %v583_v25 }
  0x4c   :  { %545 = vmatprep.subr.bf16.mxu0 %v665_v0 }
  0x4f   :  { %546 = vmatpush3.bf16.msra.mxu0 %v584_v34 }
  0x50   :  { %547 = vmatprep.subr.bf16.mxu0 %v665_v0 }
  0x53   :  { %548 = vmatpush3.bf16.msra.mxu0 %v585_v35 }
 0x109   :  { %v145_v27 = vpop.f32.mrb[0].mxu0 }
 0x10a   :  { %v146_v28 = vadd.f32 %v437_v26, %v145_v27  ;;  %v511_v29 = vpop.f32.mrb[1].mxu0 }
 0x10b   :  { %v148_v30 = vpop.f32.mrb[2].mxu0 }
 0x10c   :  { %v151_v31 = vmax.f32 %v146_v28, 0.0  ;;  %v512_v32 = vpop.f32.mrb[3].mxu0 }
 0x10e   :  { %v171_v33 = vpack.c.bf16 %v151_v31, %v151_v31 }
 0x110   :  { %530 = vmatmul.mubr.bf16.vlgmr.msra.gmra.mrb[0].mxu1 %v171_v33 }
 0x1e3   :  { %v260_v37 = vpop.f32.mrb[0].mxu1 }
 0x1e4   :  { %v261_v38 = vadd.f32 %v447_v36, %v260_v37  ;;  %v531_v39 = vpop.f32.mrb[1].mxu1 }
 0x1e5   :  { %v263_v40 = vpop.f32.mrb[2].mxu1 }
 0x1e6   :  { %v266_v41 = vmax.f32 %v261_v38, 0.0  ;;  %v532_v42 = vpop.f32.mrb[3].mxu1 }
 0x1e8   :  { %v286_v43 = vpack.c.bf16 %v266_v41, %v266_v41 }
 0x1ea   :  { %550 = vmatmul.mubr.bf16.vlgmr.msra.gmra.mrb[4].mxu0 %v286_v43 }
 0x2bd   :  { %v375_v47 = vpop.f32.mrb[4].mxu0 }
 0x2be   :  { %v376_v48 = vadd.f32 %v457_v46, %v375_v47  ;;  %v551_v49 = vpop.f32.mrb[5].mxu0 }
 0x2bf   :  { %v378_v50 = vpop.f32.mrb[6].mxu0 }
 0x2c0   :  { %381 = vst [vmem:[#allocation6] sm:$0x3] %v376_v48  ;;  %v552_v51 = vpop.f32.mrb[7].mxu0  ;;  %v385_v52 = vsel %vm384_vm2, %v376_v48, -inf }
 0x2c1   :  { %386 = vmax.xlane.f32.xlu0 %v385_v52 }
 0x34e   :  { %v387_v54 = vpop.xlane.xlu0 %386 }
 0x34f   :  { %v388_v55 = vsub.f32 %v385_v52, %v387_v54  ;;  %vm397_vm3 = vcmp.eq.f32.partialorder %v385_v52, %v387_v54 }
 0x350   :  { %v398_v56 = vsel %vm397_vm3, %v396_v53, 128.0 }
 0x351   :  { %v389_v57 = vmul.f32 1.442695, %v388_v55  ;;  %399 = vmin.xlane.f32.xlu1 %v398_v56 }
 0x353   :  { %586 = vpow2.f32 %v389_v57 }
 0x35d   :  { %v587_v58 = vpop.eup %586 }
 0x35e   :  { %391 = vadd.xlane.f32.xlu0 %v587_v58 }
 0x35f   :  { %623 = shalt.err (!%p620_p12)
}
 0x360   :  { %s624_s17 = scalar_lea.hbm %s784_s3, 32 }
 0x361   :  { %p625_p13 = scmp.ne.s32.totalorder %s784_s3, %s624_s17  ;;  %p628_p0 = scmp.lt.u32.totalorder %s624_s17, %s784_s3 }
 0x363   :  { %p630_p1 = pnand %p628_p0, %p625_p13 }
 0x365   :  { %633 = shalt.err (!%p630_p1)
}
 0x366   :  { %413 = dma.vmem_to_hbm [thread:$0]  %s411_s13, 32, %s784_s3, [#allocation5]   ;;  %vm402_vm4 = vcmask 1024  }
 0x367   :  { %s668_s26 = smov [#allocation7]  }
 0x368   :  { %s420_s27 = sshll.u32 %s668_s26, 4  ;;  %s421_s27 = int_to_ptr.vmem [resolvable:$true] %s420_s27 }
 0x369   :  { %s634_s28 = scalar_lea.vmem %s421_s27, 32  ;;  %p639_p3 = scmp.lt.s32.totalorder %s421_s27, %s421_s27 }
 0x36a   :  { %p635_p2 = scmp.ne.s32.totalorder %s421_s27, %s634_s28  ;;  %p640_p4 = scmp.lt.s32.totalorder %s634_s28, %s634_s28 }
 0x36c   :  { %p641_p5 = por %p640_p4, %p639_p3 }
 0x36e   :  { %p642_p6 = pnand %p641_p5, %p635_p2 }
 0x3de   :  { %v400_v59 = vpop.xlane.xlu1 %399 }
 0x3df   :  { %v553_v60 = vtrunc.f32 %v400_v59 }
 0x3e1   :  { %v554_v61 = vcvt.f32.s32 %v553_v60 }
 0x3e3   :  { %403 = vst.msk [vmem:[%s786_s5] sm:$0x3] %vm402_vm4, %v554_v61 }
 0x3eb   :  { %v392_v62 = vpop.xlane.xlu0 %391 }
 0x3ec   :  { %588 = vrcp.f32 %v392_v62 }
 0x3f6   :  { %v589_v63 = vpop.eup %588 }
 0x3f7   :  { %v394_v0 = vmul.f32 %v589_v63, %v587_v58 }
 0x3f9   :  { %395 = vst [vmem:[#allocation7] sm:$0x3] %v394_v0 }
 0x3fa   :  { %645 = shalt.err (!%p642_p6)
}
 0x3fb   :  { %s646_s30 = scalar_lea.hbm %s785_s4, 32 }
 0x3fc   :  { %p647_p7 = scmp.ne.s32.totalorder %s785_s4, %s646_s30  ;;  %p650_p8 = scmp.lt.u32.totalorder %s646_s30, %s785_s4 }
 0x3fe   :  { %p652_p9 = pnand %p650_p8, %p647_p7 }
 0x400   :  { %655 = shalt.err (!%p652_p9)
}
 0x401   :  { %423 = dma.vmem_to_hbm [thread:$0]  %s421_s27, 32, %s785_s4, [#allocation8]  }
 0x402   :  { %658 = dma.done.wait [#allocation5], 32  }
 0x403   :  { %659 = vsyncadd [#allocation5], 4294967264 }
 0x404   :  { %660 = dma.done.wait [#allocation8], 32  }
 0x405   :  { %661 = vsyncadd [#allocation8], 4294967264 }
 0x406   :  { %434 = vsyncpa [#allocation4], 1 }
 0x407   :  { %435 = vsyncpa [#allocation5], 1 }
 0x408   :  { %436 = vsyncpa [#allocation8], 1 }

</bundles_post_ra>
